<compile_context>
chip_gen: v7x
topology: tpu7x:2x2x1
jax: 0.10.0
libtpu: 0.0.40
codegen_flags: <defaults>
</compile_context>

<pallas_src>
import jax
import jax.numpy as jnp
from jax.experimental import pallas as pl
from jax.experimental.pallas import tpu as pltpu

LANE = 128
SUBLANE = 8


def _round_up(x, m):
    return (x + m - 1) // m * m


def make_mlp_kernel(num_layers):
    """Fused MLP kernel.

    Ref order: (state, action, w0_s, w0_a, b0, w1, b1, ..., out).
    Layer 0 consumes state/action separately (concat fused as two matmuls).
    ReLU after every layer except the last (identity output activation).
    """

    def kernel(*refs):
        state_ref, action_ref = refs[0], refs[1]
        out_ref = refs[-1]
        param_refs = refs[2:-1]
        assert len(param_refs) == 2 * num_layers + 1

        # Layer 0: cat([state, action]) @ W0 + b0
        #        == state @ W0_s + action @ W0_a + b0
        h = jnp.dot(state_ref[...], param_refs[0][...],
                    preferred_element_type=jnp.float32)
        h = h + jnp.dot(action_ref[...], param_refs[1][...],
                        preferred_element_type=jnp.float32)
        h = h + param_refs[2][...]
        if num_layers > 1:                     # act_fn = 'relu'
            h = jnp.maximum(h, 0.0)

        for li in range(1, num_layers):
            w = param_refs[2 * li + 1][...]
            b = param_refs[2 * li + 2][...]
            h = jnp.dot(h, w, preferred_element_type=jnp.float32) + b
            if li < num_layers - 1:            # act_fn = 'relu'
                h = jnp.maximum(h, 0.0)
            # else: out_act_fn = 'identity' -> nothing

        out_ref[...] = h.astype(out_ref.dtype)

    return kernel


def naive_cnn_forward(state, action, params, *, batch_tile=512):
    """Forward of NaiveCNN/QNetwork.

    params: list of (W, b) with W shape (in, out), b shape (1, out).
    Layer 0 input dim must equal state_dim + action_dim.
    """
    num_layers = len(params)
    B, state_dim = state.shape
    action_dim = action.shape[1]
    out_dim = params[-1][0].shape[1]

    # --- fuse the concat: split W0 along its input (row) dim ---------------
    w0, b0 = params[0]
    assert w0.shape[0] == state_dim + action_dim
    w0_s = w0[:state_dim]
    w0_a = w0[state_dim:]

    # --- lane-dense output: pad final layer's out dim to a 128 multiple ----
    out_pad = _round_up(out_dim, LANE)
    if num_layers == 1:
        # single-layer net: the split layer IS the final layer
        w0_s = jnp.pad(w0_s, ((0, 0), (0, out_pad - out_dim)))
        w0_a = jnp.pad(w0_a, ((0, 0), (0, out_pad - out_dim)))
        b0_p = jnp.pad(b0, ((0, 0), (0, out_pad - out_dim)))
        flat_params = [w0_s, w0_a, b0_p]
    else:
        flat_params = [w0_s, w0_a, b0]
        for w, b in params[1:-1]:
            flat_params.extend([w, b])
        w_last, b_last = params[-1]
        flat_params.append(jnp.pad(w_last, ((0, 0), (0, out_pad - out_dim))))
        flat_params.append(jnp.pad(b_last, ((0, 0), (0, out_pad - out_dim))))

    # --- batch grid: amortize dispatch/DMA overhead over many rows ---------
    tb = _round_up(min(batch_tile, _round_up(B, SUBLANE)), SUBLANE)
    b_pad = _round_up(B, tb)
    if b_pad != B:
        state = jnp.pad(state, ((0, b_pad - B), (0, 0)))
        action = jnp.pad(action, ((0, b_pad - B), (0, 0)))
    grid = (b_pad // tb,)

    kernel = make_mlp_kernel(num_layers)

    def resident(shape):
        # full-array block, constant index -> stays VMEM-resident across grid
        return pl.BlockSpec(shape, lambda i: (0, 0))

    in_specs = [
        pl.BlockSpec((tb, state_dim), lambda i: (i, 0)),
        pl.BlockSpec((tb, action_dim), lambda i: (i, 0)),
    ] + [resident(p.shape) for p in flat_params]

    out = pl.pallas_call(
        kernel,
        out_shape=jax.ShapeDtypeStruct((b_pad, out_pad), jnp.float32),
        grid=grid,
        in_specs=in_specs,
        out_specs=pl.BlockSpec((tb, out_pad), lambda i: (i, 0)),
        compiler_params=pltpu.CompilerParams(
            dimension_semantics=("parallel",)),
    )(state, action, *flat_params)

    # drop batch padding and the lane padding on the final layer
    return out[:B, :out_dim]


def init_params(key, input_dim, hidden_dims, out_dim):
    """Deterministic synthetic init (shapes match the nn.Linear layers)."""
    if isinstance(hidden_dims, int):
        hidden_dims = [hidden_dims]
    dims = [input_dim] + list(hidden_dims) + [out_dim]
    params = []
    for i in range(len(dims) - 1):
        key, kw, kb = jax.random.split(key, 3)
        fan_in, fan_out = dims[i], dims[i + 1]
        bound = 1.0 / jnp.sqrt(fan_in)
        w = jax.random.uniform(kw, (fan_in, fan_out), jnp.float32, -bound, bound)
        b = jax.random.uniform(kb, (1, fan_out), jnp.float32, -bound, bound)
        params.append((w, b))
    return params


if __name__ == "__main__":
    key = jax.random.PRNGKey(0)
    k_state, k_action, k_params = jax.random.split(key, 3)

    batch = 8
    state_dim = 16
    action_dim = 16
    input_dim = state_dim + action_dim      # cat([state, action], 1)
    hidden_dims = [32, 32]
    out_dim = 1

    state = jax.random.normal(k_state, (batch, state_dim), jnp.float32)
    action = jax.random.normal(k_action, (batch, action_dim), jnp.float32)
    params = init_params(k_params, input_dim, hidden_dims, out_dim)

    out = naive_cnn_forward(state, action, params)
    jax.block_until_ready(out)

    # Pure-JAX reference for sanity.
    x = jnp.concatenate([state, action], axis=1)
    for i, (w, b) in enumerate(params):
        x = x @ w + b
        if i < len(params) - 1:
            x = jnp.maximum(x, 0.0)
    assert out.shape == (batch, out_dim)
    assert jnp.allclose(out, x, atol=1e-5), "mismatch vs reference"

    print("KERNEL_OK")
</pallas_src>

<mosaic_0001>
module attributes {stable_mosaic.version = 11 : i64} {
  func.func @kernel(%arg0: i32, %arg1: memref<8x16xf32, #tpu.memory_space<vmem>>, %arg2: memref<8x16xf32, #tpu.memory_space<vmem>>, %arg3: memref<16x32xf32, #tpu.memory_space<vmem>>, %arg4: memref<16x32xf32, #tpu.memory_space<vmem>>, %arg5: memref<1x32xf32, #tpu.memory_space<vmem>>, %arg6: memref<32x32xf32, #tpu.memory_space<vmem>>, %arg7: memref<1x32xf32, #tpu.memory_space<vmem>>, %arg8: memref<32x128xf32, #tpu.memory_space<vmem>>, %arg9: memref<1x128xf32, #tpu.memory_space<vmem>>, %arg10: memref<8x128xf32, #tpu.memory_space<vmem>>) attributes {dimension_semantics = [#tpu.dimension_semantics<parallel>], iteration_bounds = array<i64: 1>, scalar_prefetch = 0 : i64, scratch_operands = 0 : i64, tpu.core_type = #tpu.core_type<tc>, window_params = [{transform_indices = @transform_0, window_bounds = array<i64: 8, 16>}, {transform_indices = @transform_1, window_bounds = array<i64: 8, 16>}, {pipeline_mode = #tpu.pipeline_mode<synchronous>, transform_indices = @transform_2, window_bounds = array<i64: 16, 32>}, {pipeline_mode = #tpu.pipeline_mode<synchronous>, transform_indices = @transform_3, window_bounds = array<i64: 16, 32>}, {pipeline_mode = #tpu.pipeline_mode<synchronous>, transform_indices = @transform_4, window_bounds = array<i64: 1, 32>}, {pipeline_mode = #tpu.pipeline_mode<synchronous>, transform_indices = @transform_5, window_bounds = array<i64: 32, 32>}, {pipeline_mode = #tpu.pipeline_mode<synchronous>, transform_indices = @transform_6, window_bounds = array<i64: 1, 32>}, {pipeline_mode = #tpu.pipeline_mode<synchronous>, transform_indices = @transform_7, window_bounds = array<i64: 32, 128>}, {pipeline_mode = #tpu.pipeline_mode<synchronous>, transform_indices = @transform_8, window_bounds = array<i64: 1, 128>}, {transform_indices = @transform_9, window_bounds = array<i64: 8, 128>}]} {
    %c0 = arith.constant 0 : index
    %c0_0 = arith.constant 0 : index
    %0 = vector.load %arg1[%c0, %c0_0] : memref<8x16xf32, #tpu.memory_space<vmem>>, vector<8x16xf32>
    %c0_1 = arith.constant 0 : index
    %c0_2 = arith.constant 0 : index
    %1 = vector.load %arg3[%c0_1, %c0_2] : memref<16x32xf32, #tpu.memory_space<vmem>>, vector<16x32xf32>
    %cst = arith.constant dense<0.000000e+00> : vector<8x32xf32>
    %2 = tpu.matmul %0, %1, %cst {dimension_numbers = #tpu.dot_dimension_numbers<[1], [0], [0], [1], [0, 0, 1, 1], [], []>} : vector<8x16xf32>, vector<16x32xf32>, vector<8x32xf32> -> vector<8x32xf32>
    %c0_3 = arith.constant 0 : index
    %c0_4 = arith.constant 0 : index
    %3 = vector.load %arg2[%c0_3, %c0_4] : memref<8x16xf32, #tpu.memory_space<vmem>>, vector<8x16xf32>
    %c0_5 = arith.constant 0 : index
    %c0_6 = arith.constant 0 : index
    %4 = vector.load %arg4[%c0_5, %c0_6] : memref<16x32xf32, #tpu.memory_space<vmem>>, vector<16x32xf32>
    %cst_7 = arith.constant dense<0.000000e+00> : vector<8x32xf32>
    %5 = tpu.matmul %3, %4, %cst_7 {dimension_numbers = #tpu.dot_dimension_numbers<[1], [0], [0], [1], [0, 0, 1, 1], [], []>} : vector<8x16xf32>, vector<16x32xf32>, vector<8x32xf32> -> vector<8x32xf32>
    %6 = arith.addf %2, %5 : vector<8x32xf32>
    %c0_8 = arith.constant 0 : index
    %c0_9 = arith.constant 0 : index
    %7 = vector.load %arg5[%c0_8, %c0_9] : memref<1x32xf32, #tpu.memory_space<vmem>>, vector<1x32xf32>
    %8 = vector.broadcast %7 : vector<1x32xf32> to vector<8x32xf32>
    %9 = arith.addf %6, %8 : vector<8x32xf32>
    %cst_10 = arith.constant 0.000000e+00 : f32
    %10 = vector.broadcast %cst_10 : f32 to vector<8x32xf32>
    %11 = arith.maximumf %9, %10 : vector<8x32xf32>
    %c0_11 = arith.constant 0 : index
    %c0_12 = arith.constant 0 : index
    %12 = vector.load %arg6[%c0_11, %c0_12] : memref<32x32xf32, #tpu.memory_space<vmem>>, vector<32x32xf32>
    %c0_13 = arith.constant 0 : index
    %c0_14 = arith.constant 0 : index
    %13 = vector.load %arg7[%c0_13, %c0_14] : memref<1x32xf32, #tpu.memory_space<vmem>>, vector<1x32xf32>
    %cst_15 = arith.constant dense<0.000000e+00> : vector<8x32xf32>
    %14 = tpu.matmul %11, %12, %cst_15 {dimension_numbers = #tpu.dot_dimension_numbers<[1], [0], [0], [1], [0, 0, 1, 1], [], []>} : vector<8x32xf32>, vector<32x32xf32>, vector<8x32xf32> -> vector<8x32xf32>
    %15 = vector.broadcast %13 : vector<1x32xf32> to vector<8x32xf32>
    %16 = arith.addf %14, %15 : vector<8x32xf32>
    %cst_16 = arith.constant 0.000000e+00 : f32
    %17 = vector.broadcast %cst_16 : f32 to vector<8x32xf32>
    %18 = arith.maximumf %16, %17 : vector<8x32xf32>
    %c0_17 = arith.constant 0 : index
    %c0_18 = arith.constant 0 : index
    %19 = vector.load %arg8[%c0_17, %c0_18] : memref<32x128xf32, #tpu.memory_space<vmem>>, vector<32x128xf32>
    %c0_19 = arith.constant 0 : index
    %c0_20 = arith.constant 0 : index
    %20 = vector.load %arg9[%c0_19, %c0_20] : memref<1x128xf32, #tpu.memory_space<vmem>>, vector<1x128xf32>
    %cst_21 = arith.constant dense<0.000000e+00> : vector<8x128xf32>
    %21 = tpu.matmul %18, %19, %cst_21 {dimension_numbers = #tpu.dot_dimension_numbers<[1], [0], [0], [1], [0, 0, 1, 1], [], []>} : vector<8x32xf32>, vector<32x128xf32>, vector<8x128xf32> -> vector<8x128xf32>
    %22 = vector.broadcast %20 : vector<1x128xf32> to vector<8x128xf32>
    %23 = arith.addf %21, %22 : vector<8x128xf32>
    %c0_22 = arith.constant 0 : index
    %c0_23 = arith.constant 0 : index
    %24 = vector.load %arg10[%c0_22, %c0_23] : memref<8x128xf32, #tpu.memory_space<vmem>>, vector<8x128xf32>
    tpu.vector_store %arg10[%c0_22, %c0_23], %23 {strides = array<i32>} : memref<8x128xf32, #tpu.memory_space<vmem>>, vector<8x128xf32>,
    return
  }
  func.func @transform_0(%arg0: i32) -> (i32, i32) {
    %c0_i32 = arith.constant 0 : i32
    %c0_i32_0 = arith.constant 0 : i32
    return %arg0, %c0_i32 : i32, i32
  }
  func.func @transform_1(%arg0: i32) -> (i32, i32) {
    %c0_i32 = arith.constant 0 : i32
    %c0_i32_0 = arith.constant 0 : i32
    return %arg0, %c0_i32 : i32, i32
  }
  func.func @transform_2(%arg0: i32) -> (i32, i32) {
    %c0_i32 = arith.constant 0 : i32
    %c0_i32_0 = arith.constant 0 : i32
    %c0_i32_1 = arith.constant 0 : i32
    return %c0_i32, %c0_i32_0 : i32, i32
  }
  func.func @transform_3(%arg0: i32) -> (i32, i32) {
    %c0_i32 = arith.constant 0 : i32
    %c0_i32_0 = arith.constant 0 : i32
    %c0_i32_1 = arith.constant 0 : i32
    return %c0_i32, %c0_i32_0 : i32, i32
  }
  func.func @transform_4(%arg0: i32) -> (i32, i32) {
    %c0_i32 = arith.constant 0 : i32
    %c0_i32_0 = arith.constant 0 : i32
    %c0_i32_1 = arith.constant 0 : i32
    return %c0_i32, %c0_i32_0 : i32, i32
  }
  func.func @transform_5(%arg0: i32) -> (i32, i32) {
    %c0_i32 = arith.constant 0 : i32
    %c0_i32_0 = arith.constant 0 : i32
    %c0_i32_1 = arith.constant 0 : i32
    return %c0_i32, %c0_i32_0 : i32, i32
  }
  func.func @transform_6(%arg0: i32) -> (i32, i32) {
    %c0_i32 = arith.constant 0 : i32
    %c0_i32_0 = arith.constant 0 : i32
    %c0_i32_1 = arith.constant 0 : i32
    return %c0_i32, %c0_i32_0 : i32, i32
  }
  func.func @transform_7(%arg0: i32) -> (i32, i32) {
    %c0_i32 = arith.constant 0 : i32
    %c0_i32_0 = arith.constant 0 : i32
    %c0_i32_1 = arith.constant 0 : i32
    return %c0_i32, %c0_i32_0 : i32, i32
  }
  func.func @transform_8(%arg0: i32) -> (i32, i32) {
    %c0_i32 = arith.constant 0 : i32
    %c0_i32_0 = arith.constant 0 : i32
    %c0_i32_1 = arith.constant 0 : i32
    return %c0_i32, %c0_i32_0 : i32, i32
  }
  func.func @transform_9(%arg0: i32) -> (i32, i32) {
    %c0_i32 = arith.constant 0 : i32
    %c0_i32_0 = arith.constant 0 : i32
    return %arg0, %c0_i32 : i32, i32
  }
}

</mosaic_0001>

<bundles_post_ra>
// kernel: tpu_custom_call.1
= control target key start
LH: loop header
LB: loop body
LE: loop exit
PB: predicated region body
PF: predicated region fallthrough
CT: control target
= control target key end

     0   :  { %14 = vsyncpa [#allocation3], 0  ;;  %s886_s0 = inlined_call_operand.hbm [shape: f32[8,16], index: 0, kind: input, shape index: {}]   ;;  %s887_s1 = inlined_call_operand.hbm [shape: f32[8,16], index: 1, kind: input, shape index: {}]   ;;  %s888_s2 = inlined_call_operand.hbm [shape: f32[16,32], index: 2, kind: input, shape index: {}]   ;;  %s889_s3 = inlined_call_operand.hbm [shape: f32[16,32], index: 3, kind: input, shape index: {}]   ;;  %s890_s4 = inlined_call_operand.vmem [shape: f32[1,32], index: 4, kind: input, shape index: {}]   ;;  %s891_s5 = inlined_call_operand.hbm [shape: f32[32,32], index: 5, kind: input, shape index: {}]   ;;  %s892_s6 = inlined_call_operand.vmem [shape: f32[1,32], index: 6, kind: input, shape index: {}]   ;;  %s893_s7 = inlined_call_operand.hbm [shape: f32[32,128], index: 7, kind: input, shape index: {}]   ;;  %s894_s8 = inlined_call_operand.vmem [shape: f32[1,128], index: 8, kind: input, shape index: {}]   ;;  %s895_s9 = inlined_call_operand.hbm [shape: f32[8,128], index: 9, kind: output, shape index: {}]  }
   0x1   :  { %15 = vsyncpa [#allocation6], 0 }
   0x2   :  { %16 = vsyncpa [#allocation9], 0 }
   0x3   :  { %17 = vsyncpa [#allocation12], 0 }
   0x4   :  { %18 = vsyncpa [#allocation4], 0  ;;  %s715_s30 = smov [#allocation5]   ;;  %s551_s13 = scalar_lea.hbm %s887_s1, 128 }
   0x5   :  { %s35_s10 = sshll.u32 %s715_s30, 4  ;;  %p552_p0 = scmp.ne.s32.totalorder %s887_s1, %s551_s13  ;;  %s36_s10 = int_to_ptr.vmem [resolvable:$true] %s35_s10 }
   0x6   :  { %p555_p1 = scmp.lt.u32.totalorder %s551_s13, %s887_s1 }
   0x8   :  { %p557_p2 = pnand %p555_p1, %p552_p0 }
   0xa   :  { %560 = shalt.err (!%p557_p2)
}
   0xb   :  { %s561_s18 = scalar_lea.vmem %s36_s10, 128  ;;  %p566_p4 = scmp.lt.s32.totalorder %s36_s10, %s36_s10 }
   0xc   :  { %p562_p3 = scmp.ne.s32.totalorder %s36_s10, %s561_s18  ;;  %p567_p5 = scmp.lt.s32.totalorder %s561_s18, %s561_s18 }
   0xe   :  { %p568_p6 = por %p567_p5, %p566_p4 }
  0x10   :  { %p569_p7 = pnand %p568_p6, %p562_p3 }
  0x12   :  { %572 = shalt.err (!%p569_p7)
}
  0x13   :  { %38 = dma.hbm_to_vmem [thread:$0]  %s887_s1, 128, %s36_s10, [#allocation6]  }
  0x14   :  { %s716_s21 = smov [#allocation8]   ;;  %s717_s23 = smov [#allocation2]  }
  0x15   :  { %s56_s22 = sshll.u32 %s716_s21, 4  ;;  %s25_s24 = sshll.u32 %s717_s23, 4  ;;  %s57_s22 = int_to_ptr.vmem [resolvable:$true] %s56_s22  ;;  %s26_s24 = int_to_ptr.vmem [resolvable:$true] %s25_s24 }
  0x16   :  { %s573_s27 = scalar_lea.hbm %s889_s3, 256 }
  0x17   :  { %p574_p8 = scmp.ne.s32.totalorder %s889_s3, %s573_s27  ;;  %p577_p9 = scmp.lt.u32.totalorder %s573_s27, %s889_s3 }
  0x19   :  { %p579_p10 = pnand %p577_p9, %p574_p8 }
  0x1b   :  { %582 = shalt.err (!%p579_p10)
}
  0x1c   :  { %s583_s1 = scalar_lea.vmem %s57_s22, 256  ;;  %p588_p12 = scmp.lt.s32.totalorder %s57_s22, %s57_s22 }
  0x1d   :  { %p584_p11 = scmp.ne.s32.totalorder %s57_s22, %s583_s1  ;;  %p589_p13 = scmp.lt.s32.totalorder %s583_s1, %s583_s1 }
  0x1f   :  { %p590_p0 = por %p589_p13, %p588_p12 }
  0x21   :  { %p591_p1 = pnand %p590_p0, %p584_p11 }
  0x23   :  { %594 = shalt.err (!%p591_p1)
}
  0x24   :  { %s718_s10 = smov 128   ;;  %s719_s12 = smov 8  }
  0x25   :  { %62 = dma.hbm_to_vmem [thread:$0]  %s889_s3, 256, %s57_s22, [#allocation9], %s718_s10, %s718_s10, %s719_s12  }
  0x26   :  { %s595_s17 = scalar_lea.hbm %s886_s0, 128 }
  0x27   :  { %p596_p2 = scmp.ne.s32.totalorder %s886_s0, %s595_s17  ;;  %p599_p3 = scmp.lt.u32.totalorder %s595_s17, %s886_s0 }
  0x29   :  { %p601_p4 = pnand %p599_p3, %p596_p2 }
  0x2b   :  { %604 = shalt.err (!%p601_p4)
}
  0x2c   :  { %s605_s23 = scalar_lea.vmem %s26_s24, 128  ;;  %p610_p6 = scmp.lt.s32.totalorder %s26_s24, %s26_s24 }
  0x2d   :  { %p606_p5 = scmp.ne.s32.totalorder %s26_s24, %s605_s23  ;;  %p611_p7 = scmp.lt.s32.totalorder %s605_s23, %s605_s23 }
  0x2f   :  { %p612_p8 = por %p611_p7, %p610_p6 }
  0x31   :  { %p613_p9 = pnand %p612_p8, %p606_p5 }
  0x33   :  { %616 = shalt.err (!%p613_p9)
}
  0x34   :  { %28 = dma.hbm_to_vmem [thread:$0]  %s886_s0, 128, %s26_s24, [#allocation3]  }
  0x35   :  { %s720_s25 = smov [#allocation7]   ;;  %s721_s27 = smov [#allocation10]  }
  0x36   :  { %s44_s26 = sshll.u32 %s720_s25, 4  ;;  %s70_s28 = sshll.u32 %s721_s27, 4  ;;  %s45_s26 = int_to_ptr.vmem [resolvable:$true] %s44_s26  ;;  %s71_s28 = int_to_ptr.vmem [resolvable:$true] %s70_s28 }
  0x37   :  { %s617_s11 = scalar_lea.hbm %s888_s2, 256 }
  0x38   :  { %p618_p10 = scmp.ne.s32.totalorder %s888_s2, %s617_s11  ;;  %p621_p11 = scmp.lt.u32.totalorder %s617_s11, %s888_s2 }
  0x3a   :  { %p623_p12 = pnand %p621_p11, %p618_p10 }
  0x3c   :  { %626 = shalt.err (!%p623_p12)
}
  0x3d   :  { %s627_s0 = scalar_lea.vmem %s45_s26, 256  ;;  %p632_p0 = scmp.lt.s32.totalorder %s45_s26, %s45_s26 }
  0x3e   :  { %p628_p13 = scmp.ne.s32.totalorder %s45_s26, %s627_s0  ;;  %p633_p1 = scmp.lt.s32.totalorder %s627_s0, %s627_s0 }
  0x40   :  { %p634_p2 = por %p633_p1, %p632_p0 }
  0x42   :  { %p635_p3 = pnand %p634_p2, %p628_p13 }
  0x44   :  { %638 = shalt.err (!%p635_p3)
}
  0x45   :  { %50 = dma.hbm_to_vmem [thread:$0]  %s888_s2, 256, %s45_s26, [#allocation6], %s718_s10, %s718_s10, %s719_s12  }
  0x46   :  { %s639_s19 = scalar_lea.hbm %s891_s5, 512 }
  0x47   :  { %p640_p4 = scmp.ne.s32.totalorder %s891_s5, %s639_s19  ;;  %p643_p5 = scmp.lt.u32.totalorder %s639_s19, %s891_s5 }
  0x49   :  { %p645_p6 = pnand %p643_p5, %p640_p4 }
  0x4b   :  { %648 = shalt.err (!%p645_p6)
}
  0x4c   :  { %s649_s22 = scalar_lea.vmem %s71_s28, 512  ;;  %p654_p8 = scmp.lt.s32.totalorder %s71_s28, %s71_s28 }
  0x4d   :  { %p650_p7 = scmp.ne.s32.totalorder %s71_s28, %s649_s22  ;;  %p655_p9 = scmp.lt.s32.totalorder %s649_s22, %s649_s22 }
  0x4f   :  { %p656_p10 = por %p655_p9, %p654_p8 }
  0x51   :  { %p657_p11 = pnand %p656_p10, %p650_p7 }
  0x53   :  { %660 = shalt.err (!%p657_p11)
}
  0x54   :  { %76 = dma.hbm_to_vmem [thread:$0]  %s891_s5, 512, %s71_s28, [#allocation9], %s718_s10, %s718_s10, %s719_s12  }
  0x55   :  { %s722_s26 = smov [#allocation11]   ;;  %s661_s11 = scalar_lea.hbm %s893_s7, 512 }
  0x56   :  { %s84_s27 = sshll.u32 %s722_s26, 4  ;;  %p662_p12 = scmp.ne.s32.totalorder %s893_s7, %s661_s11  ;;  %s85_s27 = int_to_ptr.vmem [resolvable:$true] %s84_s27 }
  0x57   :  { %p665_p13 = scmp.lt.u32.totalorder %s661_s11, %s893_s7 }
  0x59   :  { %p667_p0 = pnand %p665_p13, %p662_p12 }
  0x5b   :  { %670 = shalt.err (!%p667_p0)
}
  0x5c   :  { %s671_s0 = scalar_lea.vmem %s85_s27, 512  ;;  %p676_p2 = scmp.lt.s32.totalorder %s85_s27, %s85_s27 }
  0x5d   :  { %p672_p1 = scmp.ne.s32.totalorder %s85_s27, %s671_s0  ;;  %p677_p3 = scmp.lt.s32.totalorder %s671_s0, %s671_s0 }
  0x5f   :  { %p678_p4 = por %p677_p3, %p676_p2 }
  0x61   :  { %p679_p5 = pnand %p678_p4, %p672_p1 }
  0x63   :  { %682 = shalt.err (!%p679_p5)
}
  0x64   :  { %90 = dma.hbm_to_vmem [thread:$0]  %s893_s7, 512, %s85_s27, [#allocation12], %s718_s10, %s718_s10, %s719_s12  }
  0x65   :  { %705 = dma.done.wait [#allocation3], 128  }
  0x66   :  { %706 = vsyncadd [#allocation3], 4294967168 }
  0x67   :  { %707 = dma.done.wait [#allocation6], 384  }
  0x68   :  { %708 = vsyncadd [#allocation6], 4294966912 }
  0x69   :  { %709 = dma.done.wait [#allocation9], 768  }
  0x6a   :  { %710 = vsyncadd [#allocation9], 4294966528 }
  0x6b   :  { %711 = dma.done.wait [#allocation12], 512  }
  0x6c   :  { %712 = vsyncadd [#allocation12], 4294966784  ;;  %v723_v0 = vmov 0.0|0.0   ;;  %vm724_vm0 = vmmov 0   ;;  %v725_v1 = vmov 0.0   ;;  %v115_v2 = vld [vmem:[#allocation8] sm:$0xff] }
  0x6d   :  { %521 = vmatprep.subr.bf16.mxu0 %v723_v0  ;;  %524 = vmatprep.subr.bf16.mxu1 %v723_v0  ;;  %v116_v3 = vld [vmem:[#allocation8 + $0x8] sm:$0xff]  ;;  %v112_v4 = vld [vmem:[#allocation7] sm:$0xff]  ;;  %v113_v6 = vld [vmem:[#allocation7 + $0x8] sm:$0xff]  ;;  %vm117_vm1 = vcmask 130048   ;;  %vm284_vm2 = vcmask 261120   ;;  %s726_s17 = smov [#allocation13]  }
  0x6e   :  { %489 = vmatprep.mubr.msk.f32.mxu0 %vm724_vm0, %v725_v1  ;;  %496 = vmatprep.mubr.msk.f32.mxu1 %vm724_vm0, %v725_v1  ;;  %v522_v5 = vpack.c.bf16 %v116_v3, %v115_v2  ;;  %v525_v7 = vpack.c.bf16 %v113_v6, %v112_v4  ;;  %v114_v8 = vld [vmem:[#allocation5] sm:$0xff]  ;;  %v111_v9 = vld [vmem:[#allocation2] sm:$0xff]  ;;  %v273_v10 = vld [vmem:[#allocation10] sm:$0xff]  ;;  %s450_s18 = sshll.u32 %s726_s17, 4  ;;  %s451_s18 = int_to_ptr.vmem [resolvable:$true] %s450_s18 }
  0x6f   :  { %v274_v11 = vld [vmem:[#allocation10 + $0x8] sm:$0xff]  ;;  %v275_v13 = vld [vmem:[#allocation10 + $0x10] sm:$0xff]  ;;  %v276_v14 = vld [vmem:[#allocation10 + $0x18] sm:$0xff]  ;;  %s683_s19 = scalar_lea.vmem %s451_s18, 128  ;;  %p688_p7 = scmp.lt.s32.totalorder %s451_s18, %s451_s18 }
  0x70   :  { %523 = vmatpush3.bf16.msra.mxu0 %v522_v5  ;;  %526 = vmatpush3.bf16.msra.mxu1 %v525_v7  ;;  %v528_v12 = vpack.c.bf16 %v274_v11, %v273_v10  ;;  %v531_v15 = vpack.c.bf16 %v276_v14, %v275_v13  ;;  %v359_v16 = vld [vmem:[#allocation11] sm:$0xff]  ;;  %v360_v17 = vld [vmem:[#allocation11 + $0x8] sm:$0xff]  ;;  %v464_v21 = vld [vmem:[%s890_s4] ss:$0 sm:$0xff]  ;;  %p684_p6 = scmp.ne.s32.totalorder %s451_s18, %s683_s19  ;;  %p689_p8 = scmp.lt.s32.totalorder %s683_s19, %s683_s19 }
  0x71   :  { %527 = vmatprep.subr.bf16.mxu0 %v723_v0  ;;  %533 = vmatprep.subr.bf16.mxu1 %v723_v0  ;;  %v534_v18 = vpack.c.bf16 %v360_v17, %v359_v16  ;;  %v361_v27 = vld [vmem:[#allocation11 + $0x10] sm:$0xff]  ;;  %v362_v28 = vld [vmem:[#allocation11 + $0x18] sm:$0xff] }
  0x72   :  { %v537_v29 = vpack.c.bf16 %v362_v28, %v361_v27  ;;  %v465_v30 = vld [vmem:[%s892_s6] ss:$0 sm:$0xff]  ;;  %p690_p9 = por %p689_p8, %p688_p7 }
  0x73   :  { %490 = vmatmul.mubr.msk.f32.vlgmr.msra.gmra.mrb[0].mxu0 %vm117_vm1, %v114_v8  ;;  %497 = vmatmul.mubr.msk.f32.vlgmr.msra.gmra.mrb[0].mxu1 %vm117_vm1, %v111_v9  ;;  %v467_v35 = vld [vmem:[%s894_s8] ss:$0 sm:$0xff] }
  0x74   :  { %507 = vmatprep.mubr.msk.f32.mxu0 %vm724_vm0, %v725_v1  ;;  %518 = vmatprep.mubr.msk.f32.mxu1 %vm724_vm0, %v725_v1  ;;  %p691_p10 = pnand %p690_p9, %p684_p6 }
  0x75   :  { %529 = vmatpush3.bf16.msra.mxu0 %v528_v12  ;;  %535 = vmatpush3.bf16.msra.mxu1 %v534_v18 }
  0x76   :  { %530 = vmatprep.subr.bf16.mxu0 %v723_v0  ;;  %536 = vmatprep.subr.bf16.mxu1 %v723_v0 }
  0x79   :  { %532 = vmatpush3.bf16.msra.mxu0 %v531_v15  ;;  %538 = vmatpush3.bf16.msra.mxu1 %v537_v29 }
 0x146   :  { %v187_v19 = vpop.f32.mrb[0].mxu0  ;;  %v260_v20 = vpop.f32.mrb[0].mxu1 }
 0x147   :  { %v491_v22 = vpop.f32.mrb[1].mxu0  ;;  %v261_v23 = vadd.f32 %v260_v20, %v187_v19  ;;  %v498_v24 = vpop.f32.mrb[1].mxu1 }
 0x149   :  { %v271_v25 = vadd.f32 %v464_v21, %v261_v23 }
 0x14b   :  { %v272_v26 = vmax.f32 %v271_v25, 0.0 }
 0x14d   :  { %508 = vmatmul.mubr.msk.f32.vlgmr.msra.gmra.mrb[2].mxu0 %vm284_vm2, %v272_v26 }
 0x220   :  { %v354_v31 = vpop.f32.mrb[2].mxu0 }
 0x221   :  { %v355_v32 = vadd.f32 %v465_v30, %v354_v31  ;;  %v509_v33 = vpop.f32.mrb[3].mxu0 }
 0x223   :  { %v358_v34 = vmax.f32 %v355_v32, 0.0 }
 0x225   :  { %519 = vmatmul.mubr.msk.f32.vlgmr.msra.gmra.mrb[2].mxu1 %vm284_vm2, %v358_v34 }
 0x2f8   :  { %v439_v36 = vpop.f32.mrb[2].mxu1 }
 0x2f9   :  { %v440_v37 = vadd.f32 %v467_v35, %v439_v36  ;;  %v520_v38 = vpop.f32.mrb[3].mxu1 }
 0x2fb   :  { %443 = vst [vmem:[#allocation13] sm:$0xff] %v440_v37 }
 0x2fc   :  { %694 = shalt.err (!%p691_p10)
}
 0x2fd   :  { %s695_s21 = scalar_lea.hbm %s895_s9, 128 }
 0x2fe   :  { %p696_p11 = scmp.ne.s32.totalorder %s895_s9, %s695_s21  ;;  %p699_p12 = scmp.lt.u32.totalorder %s695_s21, %s895_s9 }
 0x300   :  { %p701_p13 = pnand %p699_p12, %p696_p11 }
 0x302   :  { %704 = shalt.err (!%p701_p13)
}
 0x303   :  { %453 = dma.vmem_to_hbm [thread:$0]  %s451_s18, 128, %s895_s9, [#allocation4]  }
 0x304   :  { %713 = dma.done.wait [#allocation4], 128  }
 0x305   :  { %714 = vsyncadd [#allocation4], 4294967168 }
 0x306   :  { %457 = vsyncpa [#allocation3], 1 }
 0x307   :  { %458 = vsyncpa [#allocation6], 1 }
 0x308   :  { %459 = vsyncpa [#allocation9], 1 }
 0x309   :  { %460 = vsyncpa [#allocation12], 1 }
 0x30a   :  { %461 = vsyncpa [#allocation4], 1 }

</bundles_post_ra>
